<compile_context>
chip_gen: v5e
topology: v5e:2x2
jax: 0.10.0
libtpu: 0.0.40
codegen_flags: <defaults>
</compile_context>

<pallas_src>
import math
import functools

import jax
import jax.numpy as jnp
from jax import lax
from jax.experimental import pallas as pl
from jax.experimental.pallas import tpu as pltpu

LANE = 128
_NEG_INF = -1e30              # large finite negative: avoids inf-inf -> NaN
_VMEM_LIMIT = 48 * 1024 * 1024  # <= ~48 MiB keeps headroom on v7x (64 MiB VMEM)


def _round_up(x, m):
    return ((x + m - 1) // m) * m


def _pick_tile(s, max_tile):
    """Largest tile <= max_tile that divides s and is a sublane multiple (8).

    Falls back to the full extent s (a full-dim block is always legal) instead
    of collapsing to a tiny tile, so awkward sequence lengths don't hit the
    8-row-MXU perf cliff.
    """
    if s <= max_tile:
        return s
    for t in range(max_tile, 7, -1):
        if s % t == 0 and t % 8 == 0:
            return t
    return s


# --------------------------------------------------------------------------
# Stage 1: fused QKV projection
# --------------------------------------------------------------------------
def _qkv_proj_kernel(x_ref, w_ref, b_ref, q_ref, k_ref, v_ref,
                     *, dkp, dvp, scale, compute_dtype):
    # x tile cast in-kernel (one pass, no extra HBM traffic); the fused weight
    # is pre-cast to compute_dtype in the wrapper so the resident block is not
    # re-cast every grid step.
    x = x_ref[...].astype(compute_dtype)                    # (tm, Din)
    qkv = jnp.dot(x, w_ref[...],
                  preferred_element_type=jnp.float32) + b_ref[...]
    # Fold the 1/sqrt(dk) softmax scale into Q (S*Dk mults instead of S*S).
    q_ref[...] = (qkv[:, :dkp] * scale).astype(q_ref.dtype)
    k_ref[...] = qkv[:, dkp:2 * dkp].astype(k_ref.dtype)
    v_ref[...] = qkv[:, 2 * dkp:2 * dkp + dvp].astype(v_ref.dtype)


# --------------------------------------------------------------------------
# Stage 2: flash attention (online softmax, deferred normalization)
# --------------------------------------------------------------------------
def _flash_attn_kernel(q_ref, k_ref, v_ref, o_ref, m_ref, l_ref, acc_ref,
                       *, causal, tq, tk, compute_dtype):
    q_idx = pl.program_id(1)
    kv_idx = pl.program_id(2)

    @pl.when(kv_idx == 0)
    def _init():
        m_ref[...] = jnp.full(m_ref.shape, -jnp.inf, m_ref.dtype)
        l_ref[...] = jnp.zeros(l_ref.shape, l_ref.dtype)
        acc_ref[...] = jnp.zeros(acc_ref.shape, acc_ref.dtype)

    def _tile_body(apply_mask):
        q = q_ref[...].astype(compute_dtype)      # (tq, Dkp), already scaled
        k = k_ref[...].astype(compute_dtype)      # (tk, Dkp)
        # Contract last dim vs last dim directly: no k.T / XLU transpose.
        s = lax.dot_general(q, k,
                            dimension_numbers=(((1,), (1,)), ((), ())),
                            preferred_element_type=jnp.float32)   # (tq, tk)
        if apply_mask:
            row = q_idx * tq + lax.broadcasted_iota(jnp.int32, (tq, tk), 0)
            col = kv_idx * tk + lax.broadcasted_iota(jnp.int32, (tq, tk), 1)
            s = jnp.where(col > row, _NEG_INF, s)

        m_prev = m_ref[...]
        m_new = jnp.maximum(m_prev, jnp.max(s, axis=-1, keepdims=True))
        alpha = jnp.exp(m_prev - m_new)
        p = jnp.exp(s - m_new)
        l_ref[...] = alpha * l_ref[...] + jnp.sum(p, axis=-1, keepdims=True)
        # Deferred normalization: accumulate unnormalized exp(s) @ V.
        acc_ref[...] = alpha * acc_ref[...] + jnp.dot(
            p.astype(compute_dtype), v_ref[...].astype(compute_dtype),
            preferred_element_type=jnp.float32)
        m_ref[...] = m_new

    if causal:
        q_first = q_idx * tq
        q_last = q_idx * tq + (tq - 1)
        kv_first = kv_idx * tk
        kv_last = kv_idx * tk + (tk - 1)
        visited = kv_first <= q_last        # tile has at least one col <= row
        straddles = kv_last > q_first       # tile has at least one col > row

        # Only diagonal-straddling tiles pay the iota/compare/select VPU work;
        # fully below-diagonal tiles run the plain (unmasked) body; fully
        # above-diagonal tiles are skipped (and their K/V DMA is elided via the
        # clamped index_map in the wrapper).
        @pl.when(jnp.logical_and(visited, straddles))
        def _masked():
            _tile_body(True)

        @pl.when(jnp.logical_and(visited, jnp.logical_not(straddles)))
        def _unmasked():
            _tile_body(False)
    else:
        _tile_body(False)

    @pl.when(kv_idx == pl.num_programs(2) - 1)
    def _finalize():
        # Exact reciprocal on only (tq, 1) elements; flip approx=True for the
        # EUP fast path if looser accuracy is acceptable.
        inv_l = pl.reciprocal(l_ref[...], approx=False)
        o_ref[...] = (acc_ref[...] * inv_l).astype(o_ref.dtype)


# --------------------------------------------------------------------------
# Wrapper
# --------------------------------------------------------------------------
def sdpa_pallas(x, wq, bq, wk, bk, wv, bv, *, masked=False,
                compute_dtype=jnp.bfloat16, tq=None, tk=None):
    B, S, Din = x.shape
    Dk = wq.shape[1]
    Dv = wv.shape[1]
    scale = 1.0 / math.sqrt(Dk)

    Dkp = _round_up(Dk, LANE)
    Dvp = _round_up(Dv, LANE)

    # Zero-pad head dims so every lane dim is a multiple of 128 (lane-dense
    # stores; the 128-wide MXU pays nothing extra for the padded columns).
    wq_p = jnp.pad(wq, ((0, 0), (0, Dkp - Dk)))
    wk_p = jnp.pad(wk, ((0, 0), (0, Dkp - Dk)))
    wv_p = jnp.pad(wv, ((0, 0), (0, Dvp - Dv)))
    bq_p = jnp.pad(bq, (0, Dkp - Dk))
    bk_p = jnp.pad(bk, (0, Dkp - Dk))
    bv_p = jnp.pad(bv, (0, Dvp - Dv))

    # Pre-cast the fused weight once (halves its DMA and avoids re-casting the
    # resident block on every grid step); bias stays f32 (added post-accumulate).
    w_fused = jnp.concatenate([wq_p, wk_p, wv_p], axis=1).astype(compute_dtype)
    b_fused = jnp.concatenate([bq_p, bk_p, bv_p]).reshape(1, -1)
    Dtot = 2 * Dkp + Dvp
    # TODO(synk): for very large Din on v7x (64 MiB VMEM), tile Din as a
    # trailing "arbitrary" reduction axis instead of holding the full
    # (Din, Dtot) weight block resident (it is double-buffered).

    # ---- stage 1: fused QKV projection over flattened rows ----
    BS = B * S
    BSp = _round_up(BS, 8)
    tm = _pick_tile(BSp, 512)              # bigger row tile; pad rows, don't shrink
    BSp = _round_up(BSp, tm)

    x2d = x.reshape(BS, Din)
    if BSp != BS:
        x2d = jnp.pad(x2d, ((0, BSp - BS), (0, 0)))

    qkv_dtype = compute_dtype              # bf16 intermediates halve stage-2 HBM traffic

    q2d, k2d, v2d = pl.pallas_call(
        functools.partial(_qkv_proj_kernel, dkp=Dkp, dvp=Dvp, scale=scale,
                          compute_dtype=compute_dtype),
        out_shape=(jax.ShapeDtypeStruct((BSp, Dkp), qkv_dtype),
                   jax.ShapeDtypeStruct((BSp, Dkp), qkv_dtype),
                   jax.ShapeDtypeStruct((BSp, Dvp), qkv_dtype)),
        grid=(BSp // tm,),
        in_specs=[
            pl.BlockSpec((tm, Din), lambda i: (i, 0)),
            pl.BlockSpec((Din, Dtot), lambda i: (0, 0)),
            pl.BlockSpec((1, Dtot), lambda i: (0, 0)),
        ],
        out_specs=(
            pl.BlockSpec((tm, Dkp), lambda i: (i, 0)),
            pl.BlockSpec((tm, Dkp), lambda i: (i, 0)),
            pl.BlockSpec((tm, Dvp), lambda i: (i, 0)),
        ),
        compiler_params=pltpu.CompilerParams(
            dimension_semantics=("parallel",),
            vmem_limit_bytes=_VMEM_LIMIT),
    )(x2d, w_fused, b_fused)

    if BSp != BS:
        q2d, k2d, v2d = q2d[:BS], k2d[:BS], v2d[:BS]
    q = q2d.reshape(B, S, Dkp)
    k = k2d.reshape(B, S, Dkp)
    v = v2d.reshape(B, S, Dvp)

    # ---- stage 2: flash attention over (B, q-tiles, kv-tiles) ----
    # tq up to 512 cuts K/V HBM re-reads (S/tq) 4x vs 128 and amortizes the
    # per-grid-step overhead; tk up to 256 feeds the 256-wide MXU on v6e/v7x
    # while keeping the (tq, tk) f32 score tile from spilling too hard.
    if tq is None:
        tq = _pick_tile(S, 512)
    if tk is None:
        tk = _pick_tile(S, 256)

    if masked:
        # Clamp the kv block index to the last tile actually needed for this
        # q-tile: skipped above-diagonal steps keep the same block index, so
        # Pallas elides the K/V re-copy (no wasted HBM traffic on causal path).
        def kv_index_map(b, qi, kv):
            last_needed = (qi * tq + tq - 1) // tk
            return (b, jnp.minimum(kv, last_needed), 0)
    else:
        def kv_index_map(b, qi, kv):
            return (b, kv, 0)

    out_p = pl.pallas_call(
        functools.partial(_flash_attn_kernel, causal=masked, tq=tq, tk=tk,
                          compute_dtype=compute_dtype),
        out_shape=jax.ShapeDtypeStruct((B, S, Dvp), x.dtype),
        grid=(B, S // tq, S // tk),
        in_specs=[
            pl.BlockSpec((None, tq, Dkp), lambda b, qi, kv: (b, qi, 0)),
            pl.BlockSpec((None, tk, Dkp), kv_index_map),
            pl.BlockSpec((None, tk, Dvp), kv_index_map),
        ],
        out_specs=pl.BlockSpec((None, tq, Dvp), lambda b, qi, kv: (b, qi, 0)),
        scratch_shapes=[
            pltpu.VMEM((tq, 1), jnp.float32),    # running max  m
            pltpu.VMEM((tq, 1), jnp.float32),    # running sum  l
            pltpu.VMEM((tq, Dvp), jnp.float32),  # unnormalized output acc
        ],
        compiler_params=pltpu.CompilerParams(
            dimension_semantics=("parallel", "parallel", "arbitrary"),
            vmem_limit_bytes=_VMEM_LIMIT),
    )(q, k, v)

    # TODO(synk): downstream consumers could take the lane-padded (B,S,Dvp)
    # tensor directly and skip this XLA slice (extra read+write of the output).
    return out_p[..., :Dv]


# --------------------------------------------------------------------------
# Pure-JAX reference mirroring the PyTorch forward
# --------------------------------------------------------------------------
def sdpa_ref(x, wq, bq, wk, bk, wv, bv, *, masked=False):
    Q = x @ wq + bq
    K = x @ wk + bk
    V = x @ wv + bv
    attn = jnp.einsum("bsd,btd->bst", Q, K) / math.sqrt(wq.shape[1])
    if masked:
        S = attn.shape[-1]
        mask = jnp.triu(jnp.ones((S, S), dtype=bool), k=1)
        attn = jnp.where(mask[None], -jnp.inf, attn)
    attn = jax.nn.softmax(attn, axis=-1)
    return attn @ V


def _run_case(B, S, Din, Dk, Dv, masked, seed):
    key = jax.random.PRNGKey(seed)
    kx, k1, k2, k3, k4, k5, k6 = jax.random.split(key, 7)
    x = jax.random.normal(kx, (B, S, Din), dtype=jnp.float32)
    bound = 1.0 / math.sqrt(Din)
    wq = jax.random.uniform(k1, (Din, Dk), jnp.float32, -bound, bound)
    bq = jax.random.uniform(k2, (Dk,), jnp.float32, -bound, bound)
    wk = jax.random.uniform(k3, (Din, Dk), jnp.float32, -bound, bound)
    bk = jax.random.uniform(k4, (Dk,), jnp.float32, -bound, bound)
    wv = jax.random.uniform(k5, (Din, Dv), jnp.float32, -bound, bound)
    bv = jax.random.uniform(k6, (Dv,), jnp.float32, -bound, bound)

    ref = sdpa_ref(x, wq, bq, wk, bk, wv, bv, masked=masked)

    # f32 validation path (structural correctness at tight tolerance).
    out32 = sdpa_pallas(x, wq, bq, wk, bk, wv, bv, masked=masked,
                        compute_dtype=jnp.float32)
    out32 = jax.block_until_ready(out32)
    assert out32.shape == (B, S, Dv), (out32.shape, (B, S, Dv))
    err32 = float(jnp.max(jnp.abs(out32 - ref)))
    assert jnp.allclose(out32, ref, atol=1e-5, rtol=1e-5), (
        f"f32 mismatch (B={B}, S={S}, masked={masked}): max_abs_err={err32}")

    # Default bf16 MXU path (perf configuration) at bf16-appropriate tolerance.
    out16 = sdpa_pallas(x, wq, bq, wk, bk, wv, bv, masked=masked)
    out16 = jax.block_until_ready(out16)
    assert out16.shape == (B, S, Dv), (out16.shape, (B, S, Dv))
    err16 = float(jnp.max(jnp.abs(out16 - ref)))
    assert jnp.allclose(out16, ref, atol=8e-2, rtol=8e-2), (
        f"bf16 mismatch (B={B}, S={S}, masked={masked}): max_abs_err={err16}")


if __name__ == "__main__":
    # shapes implied by the module: batch=2, seq=8, in_dim=32, kq=16, out=32
    _run_case(2, 8, 32, 16, 32, masked=False, seed=0)
    _run_case(2, 8, 32, 16, 32, masked=True, seed=0)
    # larger case exercising q/kv tiling, online softmax, causal tile/DMA skipping
    _run_case(2, 256, 32, 16, 32, masked=False, seed=1)
    _run_case(2, 256, 32, 16, 32, masked=True, seed=1)
    print("KERNEL_OK")
</pallas_src>

<mosaic_0001>
module attributes {stable_mosaic.version = 11 : i64} {
  func.func @_qkv_proj_kernel(%arg0: i32, %arg1: memref<16x32xf32, #tpu.memory_space<vmem>>, %arg2: memref<32x384xf32, #tpu.memory_space<vmem>>, %arg3: memref<1x384xf32, #tpu.memory_space<vmem>>, %arg4: memref<16x128xf32, #tpu.memory_space<vmem>>, %arg5: memref<16x128xf32, #tpu.memory_space<vmem>>, %arg6: memref<16x128xf32, #tpu.memory_space<vmem>>) attributes {dimension_semantics = [#tpu.dimension_semantics<parallel>], iteration_bounds = array<i64: 1>, scalar_prefetch = 0 : i64, scratch_operands = 0 : i64, tpu.core_type = #tpu.core_type<tc>, window_params = [{transform_indices = @transform_0, window_bounds = array<i64: 16, 32>}, {pipeline_mode = #tpu.pipeline_mode<synchronous>, transform_indices = @transform_1, window_bounds = array<i64: 32, 384>}, {pipeline_mode = #tpu.pipeline_mode<synchronous>, transform_indices = @transform_2, window_bounds = array<i64: 1, 384>}, {transform_indices = @transform_3, window_bounds = array<i64: 16, 128>}, {transform_indices = @transform_4, window_bounds = array<i64: 16, 128>}, {transform_indices = @transform_5, window_bounds = array<i64: 16, 128>}]} {
    %c0 = arith.constant 0 : index
    %c0_0 = arith.constant 0 : index
    %0 = vector.load %arg1[%c0, %c0_0] : memref<16x32xf32, #tpu.memory_space<vmem>>, vector<16x32xf32>
    %c0_1 = arith.constant 0 : index
    %c0_2 = arith.constant 0 : index
    %1 = vector.load %arg2[%c0_1, %c0_2] : memref<32x384xf32, #tpu.memory_space<vmem>>, vector<32x384xf32>
    %cst = arith.constant dense<0.000000e+00> : vector<16x384xf32>
    %2 = tpu.matmul %0, %1, %cst {dimension_numbers = #tpu.dot_dimension_numbers<[1], [0], [0], [1], [0, 0, 1, 1], [], []>} : vector<16x32xf32>, vector<32x384xf32>, vector<16x384xf32> -> vector<16x384xf32>
    %c0_3 = arith.constant 0 : index
    %c0_4 = arith.constant 0 : index
    %3 = vector.load %arg3[%c0_3, %c0_4] : memref<1x384xf32, #tpu.memory_space<vmem>>, vector<1x384xf32>
    %4 = vector.broadcast %3 : vector<1x384xf32> to vector<16x384xf32>
    %5 = arith.addf %2, %4 : vector<16x384xf32>
    %6 = vector.extract_strided_slice %5 {offsets = [0, 0], sizes = [16, 128], strides = [1, 1]} : vector<16x384xf32> to vector<16x128xf32>
    %cst_5 = arith.constant 2.500000e-01 : f32
    %7 = vector.broadcast %cst_5 : f32 to vector<16x128xf32>
    %8 = arith.mulf %6, %7 : vector<16x128xf32>
    %c0_6 = arith.constant 0 : index
    %c0_7 = arith.constant 0 : index
    %9 = vector.load %arg4[%c0_6, %c0_7] : memref<16x128xf32, #tpu.memory_space<vmem>>, vector<16x128xf32>
    tpu.vector_store %arg4[%c0_6, %c0_7], %8 {strides = array<i32>} : memref<16x128xf32, #tpu.memory_space<vmem>>, vector<16x128xf32>,
    %10 = vector.extract_strided_slice %5 {offsets = [0, 128], sizes = [16, 128], strides = [1, 1]} : vector<16x384xf32> to vector<16x128xf32>
    %c0_8 = arith.constant 0 : index
    %c0_9 = arith.constant 0 : index
    %11 = vector.load %arg5[%c0_8, %c0_9] : memref<16x128xf32, #tpu.memory_space<vmem>>, vector<16x128xf32>
    tpu.vector_store %arg5[%c0_8, %c0_9], %10 {strides = array<i32>} : memref<16x128xf32, #tpu.memory_space<vmem>>, vector<16x128xf32>,
    %12 = vector.extract_strided_slice %5 {offsets = [0, 256], sizes = [16, 128], strides = [1, 1]} : vector<16x384xf32> to vector<16x128xf32>
    %c0_10 = arith.constant 0 : index
    %c0_11 = arith.constant 0 : index
    %13 = vector.load %arg6[%c0_10, %c0_11] : memref<16x128xf32, #tpu.memory_space<vmem>>, vector<16x128xf32>
    tpu.vector_store %arg6[%c0_10, %c0_11], %12 {strides = array<i32>} : memref<16x128xf32, #tpu.memory_space<vmem>>, vector<16x128xf32>,
    return
  }
  func.func @transform_0(%arg0: i32) -> (i32, i32) {
    %c0_i32 = arith.constant 0 : i32
    %c0_i32_0 = arith.constant 0 : i32
    return %arg0, %c0_i32 : i32, i32
  }
  func.func @transform_1(%arg0: i32) -> (i32, i32) {
    %c0_i32 = arith.constant 0 : i32
    %c0_i32_0 = arith.constant 0 : i32
    %c0_i32_1 = arith.constant 0 : i32
    return %c0_i32, %c0_i32_0 : i32, i32
  }
  func.func @transform_2(%arg0: i32) -> (i32, i32) {
    %c0_i32 = arith.constant 0 : i32
    %c0_i32_0 = arith.constant 0 : i32
    %c0_i32_1 = arith.constant 0 : i32
    return %c0_i32, %c0_i32_0 : i32, i32
  }
  func.func @transform_3(%arg0: i32) -> (i32, i32) {
    %c0_i32 = arith.constant 0 : i32
    %c0_i32_0 = arith.constant 0 : i32
    return %arg0, %c0_i32 : i32, i32
  }
  func.func @transform_4(%arg0: i32) -> (i32, i32) {
    %c0_i32 = arith.constant 0 : i32
    %c0_i32_0 = arith.constant 0 : i32
    return %arg0, %c0_i32 : i32, i32
  }
  func.func @transform_5(%arg0: i32) -> (i32, i32) {
    %c0_i32 = arith.constant 0 : i32
    %c0_i32_0 = arith.constant 0 : i32
    return %arg0, %c0_i32 : i32, i32
  }
}

</mosaic_0001>

<bundles_post_ra>
// kernel: tpu_custom_call.1
= control target key start
LH: loop header
LB: loop body
LE: loop exit
PB: predicated region body
PF: predicated region fallthrough
CT: control target
= control target key end

     0   :  { %11 = vsyncpa [#allocation3], 0  ;;  %s473_s0 = inlined_call_operand.hbm [shape: f32[16,32], index: 0, kind: input, shape index: {}]   ;;  %s474_s1 = inlined_call_operand.hbm [shape: f32[32,384], index: 1, kind: input, shape index: {}]   ;;  %s475_s2 = inlined_call_operand.hbm [shape: f32[1,384], index: 2, kind: input, shape index: {}]   ;;  %s476_s3 = inlined_call_operand.hbm [shape: f32[16,128], index: 3, kind: output, shape index: {0}]   ;;  %s477_s4 = inlined_call_operand.hbm [shape: f32[16,128], index: 4, kind: output, shape index: {1}]   ;;  %s478_s5 = inlined_call_operand.hbm [shape: f32[16,128], index: 5, kind: output, shape index: {2}]  }
   0x1   :  { %12 = vsyncpa [#allocation6], 0 }
   0x2   :  { %13 = vsyncpa [#allocation4], 0  ;;  %s32_s20 = sshll.u32 %s474_s1, 4  ;;  %s33_s20 = int_to_ptr.hbm [resolvable:$true] %s32_s20 }
   0x3   :  { %14 = vsyncpa [#allocation10], 0  ;;  %s397_s21 = smov [#allocation5]   ;;  %s19_s25 = sshll.u32 %s473_s0, 4  ;;  %s20_s25 = int_to_ptr.hbm [resolvable:$true] %s19_s25 }
   0x4   :  { %s34_s22 = sshll.u32 %s397_s21, 4  ;;  %s398_s26 = smov 384   ;;  %s35_s22 = int_to_ptr.vmem [resolvable:$true] %s34_s22 }
   0x5   :  { %s399_s27 = smov 24   ;;  %s400_s28 = smov [#allocation2]  }
   0x6   :  { %40 = dma.hbm_to_vmem [thread:$0]  %s33_s20, 1536, %s35_s22, [#allocation6], %s398_s26, %s398_s26, %s399_s27  }
   0x7   :  { %s21_s29 = sshll.u32 %s400_s28, 4  ;;  %s401_s30 = smov 128   ;;  %s22_s29 = int_to_ptr.vmem [resolvable:$true] %s21_s29 }
   0x8   :  { %s402_s6 = smov 8   ;;  %s46_s8 = sshll.u32 %s475_s2, 4  ;;  %s47_s8 = int_to_ptr.hbm [resolvable:$true] %s46_s8 }
   0x9   :  { %27 = dma.hbm_to_vmem [thread:$0]  %s20_s25, 256, %s22_s29, [#allocation3], %s401_s30, %s401_s30, %s402_s6  }
   0xa   :  { %s403_s9 = smov [#allocation7]  }
   0xb   :  { %s48_s0 = sshll.u32 %s403_s9, 4  ;;  %s49_s0 = int_to_ptr.vmem [resolvable:$true] %s48_s0 }
   0xc   :  { %51 = dma.hbm_to_vmem [thread:$0]  %s47_s8, 48, %s49_s0, [#allocation6]  }
   0xd   :  { %389 = dma.done.wait [#allocation3], 256  }
   0xe   :  { %390 = vsyncadd [#allocation3], 4294967040 }
   0xf   :  { %391 = dma.done.wait [#allocation6], 1584  }
  0x10   :  { %392 = vsyncadd [#allocation6], 4294965712  ;;  %v77_v0 = vld [vmem:[#allocation5 + $0x58] sm:$0xff]  ;;  %v74_v1 = vld [vmem:[#allocation5 + $0x40] sm:$0xff]  ;;  %vm86_vm0 = vcmask 261120   ;;  %s404_s2 = smov [#allocation9]  }
  0x11   :  { %151 = vmatpush.msra.mxu2 %v77_v0  ;;  %v76_v2 = vld [vmem:[#allocation5 + $0x50] sm:$0xff]  ;;  %v75_v3 = vld [vmem:[#allocation5 + $0x48] sm:$0xff]  ;;  %v73_v5 = vld [vmem:[#allocation5 + $0x38] sm:$0xff]  ;;  %s187_s10 = sshll.u32 %s404_s2, 4  ;;  %s189_s13 = sshll.u32 %s477_s4, 4  ;;  %s188_s10 = int_to_ptr.vmem [resolvable:$true] %s187_s10  ;;  %s190_s13 = int_to_ptr.hbm [resolvable:$true] %s189_s13 }
  0x12   :  { %v71_v4 = vld [vmem:[#allocation5 + $0x28] sm:$0xff]  ;;  %128 = vmatpush.msra.mxu1 %v76_v2  ;;  %231 = vmatpush.msra.mxu3 %v75_v3  ;;  %v72_v6 = vld [vmem:[#allocation5 + $0x30] sm:$0xff]  ;;  %v70_v7 = vld [vmem:[#allocation5 + $0x20] sm:$0xff]  ;;  %s405_s14 = smov [#allocation8]   ;;  %s176_s18 = sshll.u32 %s476_s3, 4  ;;  %s177_s18 = int_to_ptr.hbm [resolvable:$true] %s176_s18 }
  0x13   :  { %152 = vmatpush.msra.mxu2 %v74_v1  ;;  %v69_v8 = vld [vmem:[#allocation5 + $0x18] sm:$0xff]  ;;  %105 = vmatpush.msra.mxu0 %v75_v3  ;;  %v68_v9 = vld [vmem:[#allocation5 + $0x10] sm:$0xff]  ;;  %v67_v11 = vld [vmem:[#allocation5 + $0x8] sm:$0xff]  ;;  %s174_s15 = sshll.u32 %s405_s14, 4  ;;  %s406_s19 = smov [#allocation11]   ;;  %s175_s15 = int_to_ptr.vmem [resolvable:$true] %s174_s15 }
  0x14   :  { %129 = vmatpush.msra.mxu1 %v73_v5  ;;  %232 = vmatpush.msra.mxu3 %v72_v6  ;;  %v64_v10 = vld [vmem:[#allocation2] sm:$0xff]  ;;  %v66_v12 = vld [vmem:[#allocation5] sm:$0xff]  ;;  %v65_v13 = vld [vmem:[#allocation2 + $0x8] sm:$0xff]  ;;  %s200_s4 = sshll.u32 %s406_s19, 4  ;;  %s202_s22 = sshll.u32 %s478_s5, 4  ;;  %s201_s4 = int_to_ptr.vmem [resolvable:$true] %s200_s4  ;;  %s203_s22 = int_to_ptr.hbm [resolvable:$true] %s202_s22 }
  0x15   :  { %153 = vmatpush.msra.mxu2 %v71_v4  ;;  %106 = vmatpush.msra.mxu0 %v72_v6  ;;  %v78_v14 = vld [vmem:[#allocation7] sm:$0x7] }
  0x16   :  { %130 = vmatpush.msra.mxu1 %v70_v7  ;;  %233 = vmatpush.msra.mxu3 %v69_v8  ;;  %v81_v15 = vperm.slane %v78_v14, 1  ;;  %v80_v16 = vperm.slane %v78_v14, 0  ;;  %v82_v19 = vperm.slane %v78_v14, 2 }
  0x17   :  { %154 = vmatpush.msra.mxu2 %v68_v9  ;;  %107 = vmatpush.msra.mxu0 %v69_v8 }
  0x18   :  { %229 = vmatmul.msk.f32.vlgmr.msra.gmra.mxu2 %vm86_vm0, %v64_v10  ;;  %131 = vmatpush.msra.mxu1 %v67_v11 }
  0x19   :  { %234 = vmatpush.msra.mxu3 %v66_v12  ;;  %227 = vmatmul.msk.f32.vlgmr.msra.gmra.mxu1 %vm86_vm0, %v64_v10 }
  0x1a   :  { %226 = vmatmul.msk.f32.vlgmr.msra.gmra.mxu3 %vm86_vm0, %v65_v13  ;;  %108 = vmatpush.msra.mxu0 %v66_v12 }
  0x1b   :  { %225 = vmatmul.msk.f32.vlgmr.msra.gmra.mxu0 %vm86_vm0, %v64_v10 }
  0x20   :  { %230 = vmatmul.msk.f32.gmra.mxu2 %vm86_vm0, %v65_v13 }
  0x21   :  { %228 = vmatmul.msk.f32.gmra.mxu1 %vm86_vm0, %v65_v13 }
  0x96   :  { %v133_v17 = vpop.f32.mrf.mxu1 }
  0x97   :  { %v134_v18 = vadd.f32 %v133_v17, %v81_v15 }
  0x98   :  { %v110_v20 = vpop.f32.mrf.mxu0 }
  0x99   :  { %166 = vst [vmem:[#allocation9] sm:$0xff] %v134_v18  ;;  %v111_v21 = vadd.f32 %v110_v20, %v80_v16 }
  0x9b   :  { %v156_v22 = vpop.f32.mrf.mxu2  ;;  %v162_v23 = vmul.f32 0.25, %v111_v21 }
  0x9c   :  { %v157_v24 = vadd.f32 %v156_v22, %v82_v19 }
  0x9d   :  { %164 = vst [vmem:[#allocation8] sm:$0xff] %v162_v23  ;;  %v113_v25 = vpop.f32.mrf.mxu3 }
  0x9e   :  { %168 = vst [vmem:[#allocation11] sm:$0xff] %v157_v24  ;;  %v114_v26 = vadd.f32 %v113_v25, %v80_v16  ;;  %v136_v27 = vpop.f32.mrf.mxu1 }
  0x9f   :  { %v137_v28 = vadd.f32 %v136_v27, %v81_v15 }
  0xa0   :  { %v163_v29 = vmul.f32 0.25, %v114_v26 }
  0xa1   :  { %167 = vst [vmem:[#allocation9 + $0x8] sm:$0xff] %v137_v28 }
  0xa2   :  { %165 = vst [vmem:[#allocation8 + $0x8] sm:$0xff] %v163_v29  ;;  %195 = dma.vmem_to_hbm [thread:$0]  %s188_s10, 256, %s190_s13, [#allocation10], %s401_s30, %s401_s30, %s402_s6  }
  0xa3   :  { %v159_v30 = vpop.f32.mrf.mxu2  ;;  %182 = dma.vmem_to_hbm [thread:$0]  %s175_s15, 256, %s177_s18, [#allocation4], %s401_s30, %s401_s30, %s402_s6  }
  0xa4   :  { %v160_v31 = vadd.f32 %v159_v30, %v82_v19 }
  0xa6   :  { %169 = vst [vmem:[#allocation11 + $0x8] sm:$0xff] %v160_v31 }
  0xa7   :  { %208 = dma.vmem_to_hbm [thread:$0]  %s201_s4, 256, %s203_s22, [#allocation10], %s401_s30, %s401_s30, %s402_s6  }
  0xa8   :  { %393 = dma.done.wait [#allocation4], 256  }
  0xa9   :  { %394 = vsyncadd [#allocation4], 4294967040 }
  0xaa   :  { %395 = dma.done.wait [#allocation10], 512  }
  0xab   :  { %396 = vsyncadd [#allocation10], 4294966784 }
  0xac   :  { %221 = vsyncpa [#allocation3], 1 }
  0xad   :  { %222 = vsyncpa [#allocation6], 1 }
  0xae   :  { %223 = vsyncpa [#allocation4], 1 }
  0xaf   :  { %224 = vsyncpa [#allocation10], 1 }

</bundles_post_ra>
